<compile_context>
chip_gen: v6e
topology: v6e:2x2x1
jax: 0.10.0
libtpu: 0.0.40
codegen_flags: <defaults>
</compile_context>

<pallas_src>
import functools

import jax
import jax.numpy as jnp
from jax import lax
from jax.experimental import pallas as pl
from jax.experimental.pallas import tpu as pltpu

EPS = 1e-5
LANE = 128


def _round_up(x, m):
    return (x + m - 1) // m * m


def _hw_defaults():
    """Generation-dependent VMEM budget and default tile sizes."""
    vmem_cap = 64 * 1024 * 1024
    try:
        vmem_cap = int(pltpu.get_tpu_info().vmem_capacity_bytes)
    except Exception:
        pass
    if vmem_cap >= 100 * 1024 * 1024:          # v5e / v6e: 128 MiB physical VMEM
        return dict(vmem_limit=80 * 1024 * 1024, tile_m=1024, tile_rows2=2048)
    # v7x (64 MiB physical) or unknown backend: stay conservative.
    return dict(vmem_limit=32 * 1024 * 1024, tile_m=512, tile_rows2=1024)


# ----------------------------- Pallas kernels --------------------------------
def conv_stats_kernel(patches_ref, w_ref, conv_ref, psum_ref, psq_ref, *, cout):
    """Pass 1: im2col GEMM tile + per-tile partial channel sum / sum-of-squares.

    No cross-tile state: every grid step writes its own conv tile and its own
    (1, 1, CP) partial-stats row, so the grid axis is safely "parallel".
    """
    acc = jnp.dot(patches_ref[...], w_ref[...],
                  preferred_element_type=jnp.float32)          # (TM, CP) f32
    conv_ref[...] = acc[:, :cout].astype(conv_ref.dtype)       # unpadded store
    psum_ref[...] = jnp.sum(acc, axis=0, keepdims=True)[None]
    psq_ref[...] = jnp.sum(acc * acc, axis=0, keepdims=True)[None]


def bn_apply_kernel(*refs, apply_relu, res_mode):
    """Pass 2: y = conv*scale + bias (+ residual[*rscale+rbias]) (+ ReLU).

    res_mode: 0 = no residual, 1 = plain residual add (identity shortcut),
    2 = residual with its own folded BN scale/bias (fused 1x1-conv shortcut).
    """
    if res_mode == 0:
        conv_ref, scale_ref, bias_ref, o_ref = refs
    elif res_mode == 1:
        conv_ref, scale_ref, bias_ref, res_ref, o_ref = refs
    else:
        (conv_ref, scale_ref, bias_ref,
         res_ref, rscale_ref, rbias_ref, o_ref) = refs

    y = conv_ref[...].astype(jnp.float32) * scale_ref[...] + bias_ref[...]
    if res_mode == 1:
        y = y + res_ref[...].astype(jnp.float32)
    elif res_mode == 2:
        y = y + (res_ref[...].astype(jnp.float32) * rscale_ref[...]
                 + rbias_ref[...])
    if apply_relu:
        y = jnp.maximum(y, 0.0)
    o_ref[...] = y.astype(o_ref.dtype)


# ------------------------------ glue (JAX) ------------------------------------
def _im2col_flat(x_nhwc, kh, kw, stride, pad):
    """(N,H,W,C) -> (M, kh*kw*C); x should already be in the compute dtype so
    the patch tensor is emitted at half width (bf16) directly."""
    N, H, W, C = x_nhwc.shape
    xp = (jnp.pad(x_nhwc, ((0, 0), (pad, pad), (pad, pad), (0, 0)))
          if pad else x_nhwc)
    Ho = (H + 2 * pad - kh) // stride + 1
    Wo = (W + 2 * pad - kw) // stride + 1
    cols = []
    for i in range(kh):
        for j in range(kw):
            sl = xp[:, i:i + stride * Ho:stride, j:j + stride * Wo:stride, :]
            cols.append(sl.reshape(N * Ho * Wo, C))
    return jnp.concatenate(cols, axis=1), Ho, Wo


def conv_stats_pallas(x_nhwc, w_oihw, gamma, beta, *, stride, pad,
                      compute_dtype, tile_m, vmem_limit, eps=EPS):
    """Conv2d(bias=False): returns raw conv output (M_pad, Cout) in the compute
    dtype plus the folded train-mode BatchNorm scale/bias (f32 per channel)."""
    Cout, Cin, kh, kw = w_oihw.shape

    patches, Ho, Wo = _im2col_flat(x_nhwc.astype(compute_dtype),
                                   kh, kw, stride, pad)
    M, Kc = patches.shape

    CP = _round_up(Cout, LANE)                      # lane pad only on weights
    # Production defaults are multiples of 256/128 (MXU-friendly); the 16 floor
    # (bf16 sublane + pack divisibility) only matters for tiny test overrides.
    TM = max(16, min(_round_up(tile_m, 16), _round_up(M, 16)))
    M_pad = _round_up(M, TM)
    n_tiles = M_pad // TM
    if M_pad != M:                                  # zero rows: no effect on stats
        patches = jnp.pad(patches, ((0, M_pad - M), (0, 0)))

    # (Cout, Cin, kh, kw) -> (kh*kw*Cin, CP), zero-padded lanes.
    w2 = jnp.transpose(w_oihw, (2, 3, 1, 0)).reshape(Kc, Cout)
    if CP != Cout:
        w2 = jnp.pad(w2, ((0, 0), (0, CP - Cout)))
    w2 = w2.astype(compute_dtype)

    conv_raw, psum, psq = pl.pallas_call(
        functools.partial(conv_stats_kernel, cout=Cout),
        grid=(n_tiles,),
        in_specs=[
            pl.BlockSpec((TM, Kc), lambda i: (i, 0)),      # streamed patches
            pl.BlockSpec((Kc, CP), lambda i: (0, 0)),      # resident weights
        ],
        out_specs=[
            pl.BlockSpec((TM, Cout), lambda i: (i, 0)),    # unpadded conv tiles
            pl.BlockSpec((1, 1, CP), lambda i: (i, 0, 0)),
            pl.BlockSpec((1, 1, CP), lambda i: (i, 0, 0)),
        ],
        out_shape=[
            jax.ShapeDtypeStruct((M_pad, Cout), compute_dtype),
            jax.ShapeDtypeStruct((n_tiles, 1, CP), jnp.float32),
            jax.ShapeDtypeStruct((n_tiles, 1, CP), jnp.float32),
        ],
        compiler_params=pltpu.CompilerParams(
            dimension_semantics=("parallel",),             # no cross-tile state
            vmem_limit_bytes=vmem_limit),
    )(patches, w2)

    # Tiny per-channel fold (<= a few KiB) done in the wrapper (f32).
    s = jnp.sum(psum, axis=(0, 1))[:Cout]
    sq = jnp.sum(psq, axis=(0, 1))[:Cout]
    inv_m = 1.0 / float(M)
    mean = s * inv_m
    # TODO(synk): Chan-style merge of per-tile centered stats for very large M.
    var = jnp.maximum(sq * inv_m - mean * mean, 0.0)
    scale = gamma.astype(jnp.float32) * lax.rsqrt(var + eps)
    bias = beta.astype(jnp.float32) - mean * scale
    return conv_raw, scale, bias, M, Ho, Wo


def _pack_factor(cout):
    """Pack R spatial rows per 128-lane row when Cout is a power-of-two divisor
    of 128 (all ResNet widths >= 8); the row-major reshape is a free view."""
    if 8 <= cout < LANE and LANE % cout == 0:
        return LANE // cout
    return 1


def _choose_tile_rows(total, target):
    """Largest divisor of `total` that is <= target and a multiple of 8;
    falls back to the full extent (always a legal block shape)."""
    if total <= target:
        return total
    for cand in range(min(target, total), 7, -1):
        if total % cand == 0 and cand % 8 == 0:
            return cand
    return total


def _fit_rows(a, rows):
    if a.shape[0] == rows:
        return a
    if a.shape[0] > rows:
        return a[:rows]
    return jnp.pad(a, ((0, rows - a.shape[0]), (0, 0)))


def bn_apply_pallas(conv_raw, scale, bias, *, M, relu, out_dtype,
                    residual=None, res_scale=None, res_bias=None,
                    tile_rows, vmem_limit):
    """Pass 2: BN apply (+ fused residual / shortcut BN) (+ ReLU), lane-packed."""
    M_pad, Cout = conv_raw.shape
    R = _pack_factor(Cout)
    if M_pad % R != 0:          # defensive fallback to the unpacked narrow path
        R = 1
    Cpack = R * Cout
    Mp = M_pad // R
    TMr = _choose_tile_rows(Mp, tile_rows)
    n_tiles = Mp // TMr

    def tilec(v):
        return jnp.tile(v.astype(jnp.float32).reshape(1, Cout), (1, R))

    row_spec = pl.BlockSpec((TMr, Cpack), lambda i: (i, 0))
    vec_spec = pl.BlockSpec((1, Cpack), lambda i: (0, 0))

    inputs = [conv_raw.reshape(Mp, Cpack), tilec(scale), tilec(bias)]
    in_specs = [row_spec, vec_spec, vec_spec]

    if residual is None:
        res_mode = 0
    else:
        res_p = _fit_rows(residual, M_pad).reshape(Mp, Cpack)
        inputs.append(res_p)
        in_specs.append(row_spec)
        if res_scale is None:
            res_mode = 1
        else:
            res_mode = 2
            inputs += [tilec(res_scale), tilec(res_bias)]
            in_specs += [vec_spec, vec_spec]

    out = pl.pallas_call(
        functools.partial(bn_apply_kernel, apply_relu=relu, res_mode=res_mode),
        grid=(n_tiles,),
        in_specs=in_specs,
        out_specs=row_spec,
        out_shape=jax.ShapeDtypeStruct((Mp, Cpack), out_dtype),
        compiler_params=pltpu.CompilerParams(
            dimension_semantics=("parallel",),             # megacore on v7x
            vmem_limit_bytes=vmem_limit),
    )(*inputs)

    return out.reshape(M_pad, Cout)[:M]


def resblock_pallas(x_nchw, p, *, stride, has_shortcut,
                    compute_dtype=jnp.bfloat16, tile_m=None, tile_rows2=None,
                    out_dtype=jnp.float32):
    """ResBlock.forward: ReLU( BN(conv2(ReLU(BN(conv1(x))))) + shortcut(x) )."""
    hw = _hw_defaults()
    tile_m = hw["tile_m"] if tile_m is None else tile_m
    tile_rows2 = hw["tile_rows2"] if tile_rows2 is None else tile_rows2
    vmem_limit = hw["vmem_limit"]

    x = jnp.transpose(x_nchw, (0, 2, 3, 1))                # NCHW -> NHWC
    N = x.shape[0]
    Cout = p["w1"].shape[0]
    kw_common = dict(compute_dtype=compute_dtype, tile_m=tile_m,
                     vmem_limit=vmem_limit)

    # left branch: conv1 + BN + ReLU
    c1, s1, b1, M1, Ho, Wo = conv_stats_pallas(
        x, p["w1"], p["g1"], p["b1"], stride=stride, pad=1, **kw_common)
    y1 = bn_apply_pallas(c1, s1, b1, M=M1, relu=True, out_dtype=compute_dtype,
                         tile_rows=tile_rows2, vmem_limit=vmem_limit)
    y1 = y1.reshape(N, Ho, Wo, Cout)

    # shortcut: conv+stats only; its BN apply is fused into conv2's pass 2.
    if has_shortcut:
        res, rs, rb, _, _, _ = conv_stats_pallas(
            x, p["ws"], p["gs"], p["bs"], stride=stride, pad=0, **kw_common)
    else:
        res = x.reshape(N * x.shape[1] * x.shape[2], x.shape[3])
        res = res.astype(compute_dtype)                    # identity (Cin == Cout)
        rs = rb = None

    # left branch: conv2 + BN, fused residual add + final ReLU
    c2, s2, b2, M2, Ho2, Wo2 = conv_stats_pallas(
        y1, p["w2"], p["g2"], p["b2"], stride=1, pad=1, **kw_common)
    out = bn_apply_pallas(c2, s2, b2, M=M2, relu=True, out_dtype=out_dtype,
                          residual=res, res_scale=rs, res_bias=rb,
                          tile_rows=tile_rows2, vmem_limit=vmem_limit)
    out = out.reshape(N, Ho2, Wo2, Cout)
    return jnp.transpose(out, (0, 3, 1, 2))                # NHWC -> NCHW


# ------------------------------ reference -------------------------------------
def _conv_bn_ref(x_nhwc, w_oihw, gamma, beta, stride, pad, relu, eps=EPS):
    w_hwio = jnp.transpose(w_oihw, (2, 3, 1, 0))
    y = lax.conv_general_dilated(x_nhwc, w_hwio, (stride, stride),
                                 [(pad, pad), (pad, pad)],
                                 dimension_numbers=("NHWC", "HWIO", "NHWC"))
    mean = jnp.mean(y, axis=(0, 1, 2), keepdims=True)
    var = jnp.mean((y - mean) ** 2, axis=(0, 1, 2), keepdims=True)
    y = (y - mean) * lax.rsqrt(var + eps) * gamma + beta
    return jnp.maximum(y, 0.0) if relu else y


def resblock_ref(x_nchw, p, *, stride, has_shortcut):
    x = jnp.transpose(x_nchw, (0, 2, 3, 1))
    l = _conv_bn_ref(x, p["w1"], p["g1"], p["b1"], stride, 1, True)
    l = _conv_bn_ref(l, p["w2"], p["g2"], p["b2"], 1, 1, False)
    r = (_conv_bn_ref(x, p["ws"], p["gs"], p["bs"], stride, 0, False)
         if has_shortcut else x)
    return jnp.transpose(jnp.maximum(l + r, 0.0), (0, 3, 1, 2))


# ------------------------------ main -------------------------------------------
def _make_params(key, cin, cout, with_shortcut):
    ks = jax.random.split(key, 9)
    p = {
        "w1": 0.1 * jax.random.normal(ks[0], (cout, cin, 3, 3), jnp.float32),
        "g1": 1.0 + 0.1 * jax.random.normal(ks[1], (cout,), jnp.float32),
        "b1": 0.1 * jax.random.normal(ks[2], (cout,), jnp.float32),
        "w2": 0.1 * jax.random.normal(ks[3], (cout, cout, 3, 3), jnp.float32),
        "g2": 1.0 + 0.1 * jax.random.normal(ks[4], (cout,), jnp.float32),
        "b2": 0.1 * jax.random.normal(ks[5], (cout,), jnp.float32),
    }
    if with_shortcut:
        p["ws"] = 0.1 * jax.random.normal(ks[6], (cout, cin, 1, 1), jnp.float32)
        p["gs"] = 1.0 + 0.1 * jax.random.normal(ks[7], (cout,), jnp.float32)
        p["bs"] = 0.1 * jax.random.normal(ks[8], (cout,), jnp.float32)
    return p


if __name__ == "__main__":
    key = jax.random.PRNGKey(0)
    kx, kp1, kp2 = jax.random.split(key, 3)

    N, Cin, H, W = 2, 4, 16, 16
    Cout = 8
    x = jax.random.normal(kx, (N, Cin, H, W), jnp.float32)  # NCHW, like PyTorch

    # Block A: ResBlock(4, 8, stride=2, shortcut=conv1x1+BN)
    pA = _make_params(kp1, Cin, Cout, with_shortcut=True)
    # Block B: ResBlock(8, 8) -> identity shortcut, stride=1
    pB = _make_params(kp2, Cout, Cout, with_shortcut=False)

    # f32 path; tile_m=64 (test override only) forces a multi-tile pass-1 grid
    # so the per-tile partial-sum BN-statistics reduction is exercised.
    blockA_f32 = jax.jit(functools.partial(
        resblock_pallas, stride=2, has_shortcut=True,
        compute_dtype=jnp.float32, tile_m=64))
    blockB_f32 = jax.jit(functools.partial(
        resblock_pallas, stride=1, has_shortcut=False,
        compute_dtype=jnp.float32, tile_m=64))

    outA = blockA_f32(x, pA)
    outB = blockB_f32(outA, pB)
    refA = resblock_ref(x, pA, stride=2, has_shortcut=True)
    refB = resblock_ref(refA, pB, stride=1, has_shortcut=False)
    jax.block_until_ready((outA, outB))

    assert outA.shape == (N, Cout, H // 2, W // 2), outA.shape
    assert outB.shape == (N, Cout, H // 2, W // 2), outB.shape
    assert jnp.allclose(outA, refA, atol=1e-4, rtol=1e-4)
    assert jnp.allclose(outB, refB, atol=1e-4, rtol=1e-4)

    # Default path: bf16 MXU inputs + bf16 streamed intermediates on every
    # generation (f32 accumulation + f32 BN math), hardware-default tiles.
    blockA_bf16 = jax.jit(functools.partial(
        resblock_pallas, stride=2, has_shortcut=True))
    outA_bf16 = blockA_bf16(x, pA)
    jax.block_until_ready(outA_bf16)
    assert outA_bf16.shape == (N, Cout, H // 2, W // 2), outA_bf16.shape
    assert jnp.allclose(outA_bf16, refA, atol=1e-1, rtol=1e-1)

    print("KERNEL_OK")
</pallas_src>

<mosaic_0001>
module attributes {stable_mosaic.version = 11 : i64} {
  func.func @conv_stats_kernel(%arg0: i32, %arg1: memref<64x36xf32, #tpu.memory_space<vmem>>, %arg2: memref<36x128xf32, #tpu.memory_space<vmem>>, %arg3: memref<64x8xf32, #tpu.memory_space<vmem>>, %arg4: memref<1x1x128xf32, #tpu.memory_space<vmem>>, %arg5: memref<1x1x128xf32, #tpu.memory_space<vmem>>) attributes {dimension_semantics = [#tpu.dimension_semantics<parallel>], iteration_bounds = array<i64: 2>, scalar_prefetch = 0 : i64, scratch_operands = 0 : i64, tpu.core_type = #tpu.core_type<tc>, window_params = [{transform_indices = @transform_0, window_bounds = array<i64: 64, 36>}, {pipeline_mode = #tpu.pipeline_mode<synchronous>, transform_indices = @transform_1, window_bounds = array<i64: 36, 128>}, {transform_indices = @transform_2, window_bounds = array<i64: 64, 8>}, {transform_indices = @transform_3, window_bounds = array<i64: 1, 1, 128>}, {transform_indices = @transform_4, window_bounds = array<i64: 1, 1, 128>}]} {
    %c0 = arith.constant 0 : index
    %c0_0 = arith.constant 0 : index
    %0 = vector.load %arg1[%c0, %c0_0] : memref<64x36xf32, #tpu.memory_space<vmem>>, vector<64x36xf32>
    %c0_1 = arith.constant 0 : index
    %c0_2 = arith.constant 0 : index
    %1 = vector.load %arg2[%c0_1, %c0_2] : memref<36x128xf32, #tpu.memory_space<vmem>>, vector<36x128xf32>
    %cst = arith.constant dense<0.000000e+00> : vector<64x128xf32>
    %2 = tpu.matmul %0, %1, %cst {dimension_numbers = #tpu.dot_dimension_numbers<[1], [0], [0], [1], [0, 0, 1, 1], [], []>} : vector<64x36xf32>, vector<36x128xf32>, vector<64x128xf32> -> vector<64x128xf32>
    %3 = vector.extract_strided_slice %2 {offsets = [0, 0], sizes = [64, 8], strides = [1, 1]} : vector<64x128xf32> to vector<64x8xf32>
    %c0_3 = arith.constant 0 : index
    %c0_4 = arith.constant 0 : index
    %4 = vector.load %arg3[%c0_3, %c0_4] : memref<64x8xf32, #tpu.memory_space<vmem>>, vector<64x8xf32>
    tpu.vector_store %arg3[%c0_3, %c0_4], %3 {strides = array<i32>} : memref<64x8xf32, #tpu.memory_space<vmem>>, vector<64x8xf32>,
    %cst_5 = arith.constant dense<0.000000e+00> : vector<128xf32>
    %5 = vector.multi_reduction <add>, %2, %cst_5 [0] : vector<64x128xf32> to vector<128xf32>
    %6 = vector.shape_cast %5 : vector<128xf32> to vector<1x128xf32>
    %7 = vector.shape_cast %6 : vector<1x128xf32> to vector<1x1x128xf32>
    %c0_6 = arith.constant 0 : index
    %c0_7 = arith.constant 0 : index
    %c0_8 = arith.constant 0 : index
    %8 = vector.load %arg4[%c0_6, %c0_7, %c0_8] : memref<1x1x128xf32, #tpu.memory_space<vmem>>, vector<1x1x128xf32>
    tpu.vector_store %arg4[%c0_6, %c0_7, %c0_8], %7 {strides = array<i32>} : memref<1x1x128xf32, #tpu.memory_space<vmem>>, vector<1x1x128xf32>,
    %9 = arith.mulf %2, %2 : vector<64x128xf32>
    %cst_9 = arith.constant dense<0.000000e+00> : vector<128xf32>
    %10 = vector.multi_reduction <add>, %9, %cst_9 [0] : vector<64x128xf32> to vector<128xf32>
    %11 = vector.shape_cast %10 : vector<128xf32> to vector<1x128xf32>
    %12 = vector.shape_cast %11 : vector<1x128xf32> to vector<1x1x128xf32>
    %c0_10 = arith.constant 0 : index
    %c0_11 = arith.constant 0 : index
    %c0_12 = arith.constant 0 : index
    %13 = vector.load %arg5[%c0_10, %c0_11, %c0_12] : memref<1x1x128xf32, #tpu.memory_space<vmem>>, vector<1x1x128xf32>
    tpu.vector_store %arg5[%c0_10, %c0_11, %c0_12], %12 {strides = array<i32>} : memref<1x1x128xf32, #tpu.memory_space<vmem>>, vector<1x1x128xf32>,
    return
  }
  func.func @transform_0(%arg0: i32) -> (i32, i32) {
    %c0_i32 = arith.constant 0 : i32
    %c0_i32_0 = arith.constant 0 : i32
    return %arg0, %c0_i32 : i32, i32
  }
  func.func @transform_1(%arg0: i32) -> (i32, i32) {
    %c0_i32 = arith.constant 0 : i32
    %c0_i32_0 = arith.constant 0 : i32
    %c0_i32_1 = arith.constant 0 : i32
    return %c0_i32, %c0_i32_0 : i32, i32
  }
  func.func @transform_2(%arg0: i32) -> (i32, i32) {
    %c0_i32 = arith.constant 0 : i32
    %c0_i32_0 = arith.constant 0 : i32
    return %arg0, %c0_i32 : i32, i32
  }
  func.func @transform_3(%arg0: i32) -> (i32, i32, i32) {
    %c0_i32 = arith.constant 0 : i32
    %c0_i32_0 = arith.constant 0 : i32
    %c0_i32_1 = arith.constant 0 : i32
    return %arg0, %c0_i32, %c0_i32_0 : i32, i32, i32
  }
  func.func @transform_4(%arg0: i32) -> (i32, i32, i32) {
    %c0_i32 = arith.constant 0 : i32
    %c0_i32_0 = arith.constant 0 : i32
    %c0_i32_1 = arith.constant 0 : i32
    return %arg0, %c0_i32, %c0_i32_0 : i32, i32, i32
  }
}

module attributes {stable_mosaic.version = 11 : i64} {
  func.func @bn_apply_kernel(%arg0: i32, %arg1: memref<8x128xf32, #tpu.memory_space<vmem>>, %arg2: memref<1x128xf32, #tpu.memory_space<vmem>>, %arg3: memref<1x128xf32, #tpu.memory_space<vmem>>, %arg4: memref<8x128xf32, #tpu.memory_space<vmem>>) attributes {dimension_semantics = [#tpu.dimension_semantics<parallel>], iteration_bounds = array<i64: 1>, scalar_prefetch = 0 : i64, scratch_operands = 0 : i64, tpu.core_type = #tpu.core_type<tc>, window_params = [{transform_indices = @transform_0, window_bounds = array<i64: 8, 128>}, {pipeline_mode = #tpu.pipeline_mode<synchronous>, transform_indices = @transform_1, window_bounds = array<i64: 1, 128>}, {pipeline_mode = #tpu.pipeline_mode<synchronous>, transform_indices = @transform_2, window_bounds = array<i64: 1, 128>}, {transform_indices = @transform_3, window_bounds = array<i64: 8, 128>}]} {
    %c0 = arith.constant 0 : index
    %c0_0 = arith.constant 0 : index
    %0 = vector.load %arg1[%c0, %c0_0] : memref<8x128xf32, #tpu.memory_space<vmem>>, vector<8x128xf32>
    %c0_1 = arith.constant 0 : index
    %c0_2 = arith.constant 0 : index
    %1 = vector.load %arg2[%c0_1, %c0_2] : memref<1x128xf32, #tpu.memory_space<vmem>>, vector<1x128xf32>
    %2 = vector.broadcast %1 : vector<1x128xf32> to vector<8x128xf32>
    %3 = arith.mulf %0, %2 : vector<8x128xf32>
    %c0_3 = arith.constant 0 : index
    %c0_4 = arith.constant 0 : index
    %4 = vector.load %arg3[%c0_3, %c0_4] : memref<1x128xf32, #tpu.memory_space<vmem>>, vector<1x128xf32>
    %5 = vector.broadcast %4 : vector<1x128xf32> to vector<8x128xf32>
    %6 = arith.addf %3, %5 : vector<8x128xf32>
    %cst = arith.constant 0.000000e+00 : f32
    %7 = vector.broadcast %cst : f32 to vector<8x128xf32>
    %8 = arith.maximumf %6, %7 : vector<8x128xf32>
    %c0_5 = arith.constant 0 : index
    %c0_6 = arith.constant 0 : index
    %9 = vector.load %arg4[%c0_5, %c0_6] : memref<8x128xf32, #tpu.memory_space<vmem>>, vector<8x128xf32>
    tpu.vector_store %arg4[%c0_5, %c0_6], %8 {strides = array<i32>} : memref<8x128xf32, #tpu.memory_space<vmem>>, vector<8x128xf32>,
    return
  }
  func.func @transform_0(%arg0: i32) -> (i32, i32) {
    %c0_i32 = arith.constant 0 : i32
    %c0_i32_0 = arith.constant 0 : i32
    return %arg0, %c0_i32 : i32, i32
  }
  func.func @transform_1(%arg0: i32) -> (i32, i32) {
    %c0_i32 = arith.constant 0 : i32
    %c0_i32_0 = arith.constant 0 : i32
    %c0_i32_1 = arith.constant 0 : i32
    return %c0_i32, %c0_i32_0 : i32, i32
  }
  func.func @transform_2(%arg0: i32) -> (i32, i32) {
    %c0_i32 = arith.constant 0 : i32
    %c0_i32_0 = arith.constant 0 : i32
    %c0_i32_1 = arith.constant 0 : i32
    return %c0_i32, %c0_i32_0 : i32, i32
  }
  func.func @transform_3(%arg0: i32) -> (i32, i32) {
    %c0_i32 = arith.constant 0 : i32
    %c0_i32_0 = arith.constant 0 : i32
    return %arg0, %c0_i32 : i32, i32
  }
}

module attributes {stable_mosaic.version = 11 : i64} {
  func.func @conv_stats_kernel(%arg0: i32, %arg1: memref<64x72xf32, #tpu.memory_space<vmem>>, %arg2: memref<72x128xf32, #tpu.memory_space<vmem>>, %arg3: memref<64x8xf32, #tpu.memory_space<vmem>>, %arg4: memref<1x1x128xf32, #tpu.memory_space<vmem>>, %arg5: memref<1x1x128xf32, #tpu.memory_space<vmem>>) attributes {dimension_semantics = [#tpu.dimension_semantics<parallel>], iteration_bounds = array<i64: 2>, scalar_prefetch = 0 : i64, scratch_operands = 0 : i64, tpu.core_type = #tpu.core_type<tc>, window_params = [{transform_indices = @transform_0, window_bounds = array<i64: 64, 72>}, {pipeline_mode = #tpu.pipeline_mode<synchronous>, transform_indices = @transform_1, window_bounds = array<i64: 72, 128>}, {transform_indices = @transform_2, window_bounds = array<i64: 64, 8>}, {transform_indices = @transform_3, window_bounds = array<i64: 1, 1, 128>}, {transform_indices = @transform_4, window_bounds = array<i64: 1, 1, 128>}]} {
    %c0 = arith.constant 0 : index
    %c0_0 = arith.constant 0 : index
    %0 = vector.load %arg1[%c0, %c0_0] : memref<64x72xf32, #tpu.memory_space<vmem>>, vector<64x72xf32>
    %c0_1 = arith.constant 0 : index
    %c0_2 = arith.constant 0 : index
    %1 = vector.load %arg2[%c0_1, %c0_2] : memref<72x128xf32, #tpu.memory_space<vmem>>, vector<72x128xf32>
    %cst = arith.constant dense<0.000000e+00> : vector<64x128xf32>
    %2 = tpu.matmul %0, %1, %cst {dimension_numbers = #tpu.dot_dimension_numbers<[1], [0], [0], [1], [0, 0, 1, 1], [], []>} : vector<64x72xf32>, vector<72x128xf32>, vector<64x128xf32> -> vector<64x128xf32>
    %3 = vector.extract_strided_slice %2 {offsets = [0, 0], sizes = [64, 8], strides = [1, 1]} : vector<64x128xf32> to vector<64x8xf32>
    %c0_3 = arith.constant 0 : index
    %c0_4 = arith.constant 0 : index
    %4 = vector.load %arg3[%c0_3, %c0_4] : memref<64x8xf32, #tpu.memory_space<vmem>>, vector<64x8xf32>
    tpu.vector_store %arg3[%c0_3, %c0_4], %3 {strides = array<i32>} : memref<64x8xf32, #tpu.memory_space<vmem>>, vector<64x8xf32>,
    %cst_5 = arith.constant dense<0.000000e+00> : vector<128xf32>
    %5 = vector.multi_reduction <add>, %2, %cst_5 [0] : vector<64x128xf32> to vector<128xf32>
    %6 = vector.shape_cast %5 : vector<128xf32> to vector<1x128xf32>
    %7 = vector.shape_cast %6 : vector<1x128xf32> to vector<1x1x128xf32>
    %c0_6 = arith.constant 0 : index
    %c0_7 = arith.constant 0 : index
    %c0_8 = arith.constant 0 : index
    %8 = vector.load %arg4[%c0_6, %c0_7, %c0_8] : memref<1x1x128xf32, #tpu.memory_space<vmem>>, vector<1x1x128xf32>
    tpu.vector_store %arg4[%c0_6, %c0_7, %c0_8], %7 {strides = array<i32>} : memref<1x1x128xf32, #tpu.memory_space<vmem>>, vector<1x1x128xf32>,
    %9 = arith.mulf %2, %2 : vector<64x128xf32>
    %cst_9 = arith.constant dense<0.000000e+00> : vector<128xf32>
    %10 = vector.multi_reduction <add>, %9, %cst_9 [0] : vector<64x128xf32> to vector<128xf32>
    %11 = vector.shape_cast %10 : vector<128xf32> to vector<1x128xf32>
    %12 = vector.shape_cast %11 : vector<1x128xf32> to vector<1x1x128xf32>
    %c0_10 = arith.constant 0 : index
    %c0_11 = arith.constant 0 : index
    %c0_12 = arith.constant 0 : index
    %13 = vector.load %arg5[%c0_10, %c0_11, %c0_12] : memref<1x1x128xf32, #tpu.memory_space<vmem>>, vector<1x1x128xf32>
    tpu.vector_store %arg5[%c0_10, %c0_11, %c0_12], %12 {strides = array<i32>} : memref<1x1x128xf32, #tpu.memory_space<vmem>>, vector<1x1x128xf32>,
    return
  }
  func.func @transform_0(%arg0: i32) -> (i32, i32) {
    %c0_i32 = arith.constant 0 : i32
    %c0_i32_0 = arith.constant 0 : i32
    return %arg0, %c0_i32 : i32, i32
  }
  func.func @transform_1(%arg0: i32) -> (i32, i32) {
    %c0_i32 = arith.constant 0 : i32
    %c0_i32_0 = arith.constant 0 : i32
    %c0_i32_1 = arith.constant 0 : i32
    return %c0_i32, %c0_i32_0 : i32, i32
  }
  func.func @transform_2(%arg0: i32) -> (i32, i32) {
    %c0_i32 = arith.constant 0 : i32
    %c0_i32_0 = arith.constant 0 : i32
    return %arg0, %c0_i32 : i32, i32
  }
  func.func @transform_3(%arg0: i32) -> (i32, i32, i32) {
    %c0_i32 = arith.constant 0 : i32
    %c0_i32_0 = arith.constant 0 : i32
    %c0_i32_1 = arith.constant 0 : i32
    return %arg0, %c0_i32, %c0_i32_0 : i32, i32, i32
  }
  func.func @transform_4(%arg0: i32) -> (i32, i32, i32) {
    %c0_i32 = arith.constant 0 : i32
    %c0_i32_0 = arith.constant 0 : i32
    %c0_i32_1 = arith.constant 0 : i32
    return %arg0, %c0_i32, %c0_i32_0 : i32, i32, i32
  }
}

module attributes {stable_mosaic.version = 11 : i64} {
  func.func @conv_stats_kernel(%arg0: i32, %arg1: memref<64x4xf32, #tpu.memory_space<vmem>>, %arg2: memref<4x128xf32, #tpu.memory_space<vmem>>, %arg3: memref<64x8xf32, #tpu.memory_space<vmem>>, %arg4: memref<1x1x128xf32, #tpu.memory_space<vmem>>, %arg5: memref<1x1x128xf32, #tpu.memory_space<vmem>>) attributes {dimension_semantics = [#tpu.dimension_semantics<parallel>], iteration_bounds = array<i64: 2>, scalar_prefetch = 0 : i64, scratch_operands = 0 : i64, tpu.core_type = #tpu.core_type<tc>, window_params = [{transform_indices = @transform_0, window_bounds = array<i64: 64, 4>}, {pipeline_mode = #tpu.pipeline_mode<synchronous>, transform_indices = @transform_1, window_bounds = array<i64: 4, 128>}, {transform_indices = @transform_2, window_bounds = array<i64: 64, 8>}, {transform_indices = @transform_3, window_bounds = array<i64: 1, 1, 128>}, {transform_indices = @transform_4, window_bounds = array<i64: 1, 1, 128>}]} {
    %c0 = arith.constant 0 : index
    %c0_0 = arith.constant 0 : index
    %0 = vector.load %arg1[%c0, %c0_0] : memref<64x4xf32, #tpu.memory_space<vmem>>, vector<64x4xf32>
    %c0_1 = arith.constant 0 : index
    %c0_2 = arith.constant 0 : index
    %1 = vector.load %arg2[%c0_1, %c0_2] : memref<4x128xf32, #tpu.memory_space<vmem>>, vector<4x128xf32>
    %cst = arith.constant dense<0.000000e+00> : vector<64x128xf32>
    %2 = tpu.matmul %0, %1, %cst {dimension_numbers = #tpu.dot_dimension_numbers<[1], [0], [0], [1], [0, 0, 1, 1], [], []>} : vector<64x4xf32>, vector<4x128xf32>, vector<64x128xf32> -> vector<64x128xf32>
    %3 = vector.extract_strided_slice %2 {offsets = [0, 0], sizes = [64, 8], strides = [1, 1]} : vector<64x128xf32> to vector<64x8xf32>
    %c0_3 = arith.constant 0 : index
    %c0_4 = arith.constant 0 : index
    %4 = vector.load %arg3[%c0_3, %c0_4] : memref<64x8xf32, #tpu.memory_space<vmem>>, vector<64x8xf32>
    tpu.vector_store %arg3[%c0_3, %c0_4], %3 {strides = array<i32>} : memref<64x8xf32, #tpu.memory_space<vmem>>, vector<64x8xf32>,
    %cst_5 = arith.constant dense<0.000000e+00> : vector<128xf32>
    %5 = vector.multi_reduction <add>, %2, %cst_5 [0] : vector<64x128xf32> to vector<128xf32>
    %6 = vector.shape_cast %5 : vector<128xf32> to vector<1x128xf32>
    %7 = vector.shape_cast %6 : vector<1x128xf32> to vector<1x1x128xf32>
    %c0_6 = arith.constant 0 : index
    %c0_7 = arith.constant 0 : index
    %c0_8 = arith.constant 0 : index
    %8 = vector.load %arg4[%c0_6, %c0_7, %c0_8] : memref<1x1x128xf32, #tpu.memory_space<vmem>>, vector<1x1x128xf32>
    tpu.vector_store %arg4[%c0_6, %c0_7, %c0_8], %7 {strides = array<i32>} : memref<1x1x128xf32, #tpu.memory_space<vmem>>, vector<1x1x128xf32>,
    %9 = arith.mulf %2, %2 : vector<64x128xf32>
    %cst_9 = arith.constant dense<0.000000e+00> : vector<128xf32>
    %10 = vector.multi_reduction <add>, %9, %cst_9 [0] : vector<64x128xf32> to vector<128xf32>
    %11 = vector.shape_cast %10 : vector<128xf32> to vector<1x128xf32>
    %12 = vector.shape_cast %11 : vector<1x128xf32> to vector<1x1x128xf32>
    %c0_10 = arith.constant 0 : index
    %c0_11 = arith.constant 0 : index
    %c0_12 = arith.constant 0 : index
    %13 = vector.load %arg5[%c0_10, %c0_11, %c0_12] : memref<1x1x128xf32, #tpu.memory_space<vmem>>, vector<1x1x128xf32>
    tpu.vector_store %arg5[%c0_10, %c0_11, %c0_12], %12 {strides = array<i32>} : memref<1x1x128xf32, #tpu.memory_space<vmem>>, vector<1x1x128xf32>,
    return
  }
  func.func @transform_0(%arg0: i32) -> (i32, i32) {
    %c0_i32 = arith.constant 0 : i32
    %c0_i32_0 = arith.constant 0 : i32
    return %arg0, %c0_i32 : i32, i32
  }
  func.func @transform_1(%arg0: i32) -> (i32, i32) {
    %c0_i32 = arith.constant 0 : i32
    %c0_i32_0 = arith.constant 0 : i32
    %c0_i32_1 = arith.constant 0 : i32
    return %c0_i32, %c0_i32_0 : i32, i32
  }
  func.func @transform_2(%arg0: i32) -> (i32, i32) {
    %c0_i32 = arith.constant 0 : i32
    %c0_i32_0 = arith.constant 0 : i32
    return %arg0, %c0_i32 : i32, i32
  }
  func.func @transform_3(%arg0: i32) -> (i32, i32, i32) {
    %c0_i32 = arith.constant 0 : i32
    %c0_i32_0 = arith.constant 0 : i32
    %c0_i32_1 = arith.constant 0 : i32
    return %arg0, %c0_i32, %c0_i32_0 : i32, i32, i32
  }
  func.func @transform_4(%arg0: i32) -> (i32, i32, i32) {
    %c0_i32 = arith.constant 0 : i32
    %c0_i32_0 = arith.constant 0 : i32
    %c0_i32_1 = arith.constant 0 : i32
    return %arg0, %c0_i32, %c0_i32_0 : i32, i32, i32
  }
}

module attributes {stable_mosaic.version = 11 : i64} {
  func.func @bn_apply_kernel(%arg0: i32, %arg1: memref<8x128xf32, #tpu.memory_space<vmem>>, %arg2: memref<1x128xf32, #tpu.memory_space<vmem>>, %arg3: memref<1x128xf32, #tpu.memory_space<vmem>>, %arg4: memref<8x128xf32, #tpu.memory_space<vmem>>, %arg5: memref<1x128xf32, #tpu.memory_space<vmem>>, %arg6: memref<1x128xf32, #tpu.memory_space<vmem>>, %arg7: memref<8x128xf32, #tpu.memory_space<vmem>>) attributes {dimension_semantics = [#tpu.dimension_semantics<parallel>], iteration_bounds = array<i64: 1>, scalar_prefetch = 0 : i64, scratch_operands = 0 : i64, tpu.core_type = #tpu.core_type<tc>, window_params = [{transform_indices = @transform_0, window_bounds = array<i64: 8, 128>}, {pipeline_mode = #tpu.pipeline_mode<synchronous>, transform_indices = @transform_1, window_bounds = array<i64: 1, 128>}, {pipeline_mode = #tpu.pipeline_mode<synchronous>, transform_indices = @transform_2, window_bounds = array<i64: 1, 128>}, {transform_indices = @transform_3, window_bounds = array<i64: 8, 128>}, {pipeline_mode = #tpu.pipeline_mode<synchronous>, transform_indices = @transform_4, window_bounds = array<i64: 1, 128>}, {pipeline_mode = #tpu.pipeline_mode<synchronous>, transform_indices = @transform_5, window_bounds = array<i64: 1, 128>}, {transform_indices = @transform_6, window_bounds = array<i64: 8, 128>}]} {
    %c0 = arith.constant 0 : index
    %c0_0 = arith.constant 0 : index
    %0 = vector.load %arg1[%c0, %c0_0] : memref<8x128xf32, #tpu.memory_space<vmem>>, vector<8x128xf32>
    %c0_1 = arith.constant 0 : index
    %c0_2 = arith.constant 0 : index
    %1 = vector.load %arg2[%c0_1, %c0_2] : memref<1x128xf32, #tpu.memory_space<vmem>>, vector<1x128xf32>
    %2 = vector.broadcast %1 : vector<1x128xf32> to vector<8x128xf32>
    %3 = arith.mulf %0, %2 : vector<8x128xf32>
    %c0_3 = arith.constant 0 : index
    %c0_4 = arith.constant 0 : index
    %4 = vector.load %arg3[%c0_3, %c0_4] : memref<1x128xf32, #tpu.memory_space<vmem>>, vector<1x128xf32>
    %5 = vector.broadcast %4 : vector<1x128xf32> to vector<8x128xf32>
    %6 = arith.addf %3, %5 : vector<8x128xf32>
    %c0_5 = arith.constant 0 : index
    %c0_6 = arith.constant 0 : index
    %7 = vector.load %arg4[%c0_5, %c0_6] : memref<8x128xf32, #tpu.memory_space<vmem>>, vector<8x128xf32>
    %c0_7 = arith.constant 0 : index
    %c0_8 = arith.constant 0 : index
    %8 = vector.load %arg5[%c0_7, %c0_8] : memref<1x128xf32, #tpu.memory_space<vmem>>, vector<1x128xf32>
    %9 = vector.broadcast %8 : vector<1x128xf32> to vector<8x128xf32>
    %10 = arith.mulf %7, %9 : vector<8x128xf32>
    %c0_9 = arith.constant 0 : index
    %c0_10 = arith.constant 0 : index
    %11 = vector.load %arg6[%c0_9, %c0_10] : memref<1x128xf32, #tpu.memory_space<vmem>>, vector<1x128xf32>
    %12 = vector.broadcast %11 : vector<1x128xf32> to vector<8x128xf32>
    %13 = arith.addf %10, %12 : vector<8x128xf32>
    %14 = arith.addf %6, %13 : vector<8x128xf32>
    %cst = arith.constant 0.000000e+00 : f32
    %15 = vector.broadcast %cst : f32 to vector<8x128xf32>
    %16 = arith.maximumf %14, %15 : vector<8x128xf32>
    %c0_11 = arith.constant 0 : index
    %c0_12 = arith.constant 0 : index
    %17 = vector.load %arg7[%c0_11, %c0_12] : memref<8x128xf32, #tpu.memory_space<vmem>>, vector<8x128xf32>
    tpu.vector_store %arg7[%c0_11, %c0_12], %16 {strides = array<i32>} : memref<8x128xf32, #tpu.memory_space<vmem>>, vector<8x128xf32>,
    return
  }
  func.func @transform_0(%arg0: i32) -> (i32, i32) {
    %c0_i32 = arith.constant 0 : i32
    %c0_i32_0 = arith.constant 0 : i32
    return %arg0, %c0_i32 : i32, i32
  }
  func.func @transform_1(%arg0: i32) -> (i32, i32) {
    %c0_i32 = arith.constant 0 : i32
    %c0_i32_0 = arith.constant 0 : i32
    %c0_i32_1 = arith.constant 0 : i32
    return %c0_i32, %c0_i32_0 : i32, i32
  }
  func.func @transform_2(%arg0: i32) -> (i32, i32) {
    %c0_i32 = arith.constant 0 : i32
    %c0_i32_0 = arith.constant 0 : i32
    %c0_i32_1 = arith.constant 0 : i32
    return %c0_i32, %c0_i32_0 : i32, i32
  }
  func.func @transform_3(%arg0: i32) -> (i32, i32) {
    %c0_i32 = arith.constant 0 : i32
    %c0_i32_0 = arith.constant 0 : i32
    return %arg0, %c0_i32 : i32, i32
  }
  func.func @transform_4(%arg0: i32) -> (i32, i32) {
    %c0_i32 = arith.constant 0 : i32
    %c0_i32_0 = arith.constant 0 : i32
    %c0_i32_1 = arith.constant 0 : i32
    return %c0_i32, %c0_i32_0 : i32, i32
  }
  func.func @transform_5(%arg0: i32) -> (i32, i32) {
    %c0_i32 = arith.constant 0 : i32
    %c0_i32_0 = arith.constant 0 : i32
    %c0_i32_1 = arith.constant 0 : i32
    return %c0_i32, %c0_i32_0 : i32, i32
  }
  func.func @transform_6(%arg0: i32) -> (i32, i32) {
    %c0_i32 = arith.constant 0 : i32
    %c0_i32_0 = arith.constant 0 : i32
    return %arg0, %c0_i32 : i32, i32
  }
}

</mosaic_0001>

<bundles_post_ra>
// kernel: resblock_pallas.6
= control target key start
LH: loop header
LB: loop body
LE: loop exit
PB: predicated region body
PF: predicated region fallthrough
CT: control target
= control target key end

     0   :  { %s71_s0 = inlined_call_operand.vmem [shape: f32[8,128], index: 0, kind: input, shape index: {}]   ;;  %s72_s1 = inlined_call_operand.vmem [shape: f32[1,128], index: 1, kind: input, shape index: {}]   ;;  %s73_s2 = inlined_call_operand.vmem [shape: f32[1,128], index: 2, kind: input, shape index: {}]   ;;  %s74_s3 = inlined_call_operand.vmem [shape: f32[8,128], index: 3, kind: output, shape index: {}]  }
   0x1   :  { %v14_v0 = vld [vmem:[%s71_s0] sm:$0xff] }
   0x2   :  { %v37_v1 = vld [vmem:[%s72_s1] ss:$0 sm:$0xff] }
   0x3   :  { %v38_v2 = vld [vmem:[%s73_s2] ss:$0 sm:$0xff]  ;;  %v22_v3 = vmul.f32 %v37_v1, %v14_v0 }
   0x5   :  { %v30_v4 = vadd.f32 %v38_v2, %v22_v3 }
   0x7   :  { %v31_v5 = vmax.f32 %v30_v4, 0.0 }
   0x9   :  { %32 = vst [vmem:[%s74_s3] sm:$0xff] %v31_v5 }

// kernel: resblock_pallas.5
= control target key start
LH: loop header
LB: loop body
LE: loop exit
PB: predicated region body
PF: predicated region fallthrough
CT: control target
= control target key end

     0   :  { %s622_s15 = smov 0   ;;  %s688_s0 = inlined_call_operand.vmem [shape: f32[128,36], index: 0, kind: input, shape index: {}]   ;;  %s689_s1 = inlined_call_operand.vmem [shape: f32[36,128], index: 1, kind: input, shape index: {}]   ;;  %s690_s2 = inlined_call_operand.vmem [shape: f32[128,8], index: 2, kind: output, shape index: {0}]   ;;  %s691_s3 = inlined_call_operand.vmem [shape: f32[2,1,128], index: 3, kind: output, shape index: {1}]   ;;  %s692_s4 = inlined_call_operand.vmem [shape: f32[2,1,128], index: 4, kind: output, shape index: {2}]  }
   0x1 LB: > { %s628_s16 = sadd.s32 4294967295, %s595_s15   ;;  %p520_p0 = scmp.ge.s32.totalorder %s595_s15, 1  ;;  %s595_s15 = sphi %s622_s15, %s15_s15  }
   0x2   : > { %p168_p1 = scmp.lt.s32.totalorder %s595_s15, 3 }
   0x4   : > { %p169_p2 = pnand %p520_p0, %p168_p1 }
   0x5   : > { %s521_s21 = sshll.u32 (!%p169_p2), %s628_s16, 3  ;;  %p212_p4 = scmp.lt.s32.totalorder (!%p169_p2), %s628_s16, 1 }
   0x6   : > { %172 = sbr.rel (%p169_p2) target bundleno = 248 (0xf8), region = 28  ;;  %p201_p3 = scmp.lt.s32.totalorder (!%p169_p2), %s521_s21, 15 }
   0xb   : > { %v230_v0 = vld [vmem:[%s689_s1 + $0x20] sm:$0xf]  ;;  %vm256_vm0 = vcmask 1043456   ;;  %v229_v1 = vld [vmem:[%s689_s1 + $0x18] sm:$0xff]  ;;  %v228_v2 = vld [vmem:[%s689_s1 + $0x10] sm:$0xff]  ;;  %s694_s21 = smov (!%p201_p3, %s521_s21), 15 }
   0xc   : > { %549 = vmatprep.subr.msk.mxu0 %vm256_vm0, %v230_v0  ;;  %571 = vmatprep.subr.msk.mxu1 %vm256_vm0, %v230_v0  ;;  %v227_v3 = vld [vmem:[%s689_s1 + $0x8] sm:$0xff]  ;;  %s522_s26 = sshll.u32 %s694_s21, 3  ;;  %vm231_vm1 = vcmask 293888   ;;  %v226_v4 = vld [vmem:[%s689_s1] sm:$0xff]  ;;  %vm365_vm2 = vcmask 64512   ;;  %s696_s16 = smov (!%p212_p4, %s628_s16), 1 }
   0xd   : > { %550 = vmatpush3.msk.msra.mxu0 %vm256_vm0, %v230_v0  ;;  %576 = vmatpush3.msk.msra.mxu1 %vm256_vm0, %v230_v0  ;;  %s204_s5 = scalar_lea.vmem %s688_s0, %s522_s26  ;;  %s210_s8 = scalar_lea.vmem %s690_s2, %s522_s26 }
   0xe   : > { %551 = vmatprep.subr.mxu0 %v229_v1  ;;  %572 = vmatprep.subr.mxu1 %v229_v1  ;;  %v218_v5 = vld [vmem:[%s204_s5] sm:$0xff]  ;;  %v219_v6 = vld [vmem:[%s204_s5 + $0x8] sm:$0xff]  ;;  %v220_v7 = vld [vmem:[%s204_s5 + $0x10] sm:$0xff]  ;;  %s214_s11 = scalar_lea.vmem %s691_s3, %s696_s16  ;;  %s217_s14 = scalar_lea.vmem %s692_s4, %s696_s16 }
   0xf   : > { %552 = vmatpush3.msra.mxu0 %v229_v1  ;;  %577 = vmatpush3.msra.mxu1 %v229_v1  ;;  %v222_v8 = vld [vmem:[%s204_s5 + $0x20] sm:$0xff]  ;;  %v223_v9 = vld [vmem:[%s204_s5 + $0x28] sm:$0xff]  ;;  %v224_v10 = vld [vmem:[%s204_s5 + $0x30] sm:$0xff] }
  0x10   : > { %553 = vmatprep.subr.mxu0 %v228_v2  ;;  %573 = vmatprep.subr.mxu1 %v228_v2  ;;  %v221_v11 = vld [vmem:[%s204_s5 + $0x18] sm:$0xff] }
  0x11   : > { %554 = vmatpush3.msra.mxu0 %v228_v2  ;;  %578 = vmatpush3.msra.mxu1 %v228_v2  ;;  %v225_v12 = vld [vmem:[%s204_s5 + $0x38] sm:$0xff] }
  0x12   : > { %555 = vmatprep.subr.mxu0 %v227_v3  ;;  %574 = vmatprep.subr.mxu1 %v227_v3 }
  0x13   : > { %556 = vmatpush3.msra.mxu0 %v227_v3  ;;  %559 = vmatprep.mubr.msk.f32.mxu0 %vm231_vm1, %v218_v5 }
  0x14   : > { %557 = vmatprep.subr.mxu0 %v226_v4  ;;  %579 = vmatpush3.msra.mxu1 %v227_v3 }
  0x15   : > { %558 = vmatpush3.msra.mxu0 %v226_v4  ;;  %575 = vmatprep.subr.mxu1 %v226_v4 }
  0x16   : > { %560 = vmatmul.mubr.msk.f32.vlgmr.msra.gmra.mxu0 %vm231_vm1, %v219_v6  ;;  %580 = vmatpush3.msra.mxu1 %v226_v4 }
  0x17   : > { %562 = vmatprep.mubr.msk.f32.mxu0 %vm231_vm1, %v220_v7  ;;  %565 = vmatprep.mubr.msk.f32.mxu1 %vm231_vm1, %v222_v8 }
  0x18   : > { %566 = vmatmul.mubr.msk.f32.vlgmr.msra.gmra.mxu1 %vm231_vm1, %v223_v9 }
  0x19   : > { %568 = vmatprep.mubr.msk.f32.mxu1 %vm231_vm1, %v224_v10 }
  0x1a   : > { %563 = vmatmul.mubr.msk.f32.gmra.mxu0 %vm231_vm1, %v221_v11 }
  0x1c   : > { %569 = vmatmul.mubr.msk.f32.gmra.mxu1 %vm231_vm1, %v225_v12 }
  0xd6   : > { %v561_v13 = vpop.f32.mrf.mxu0 }
  0xd7   : > { %367 = vst.msk [vmem:[%s210_s8 + $0x8] sm:$0xff] %vm365_vm2, %v561_v13  ;;  %v389_v19 = vmul.f32 %v561_v13, %v561_v13 }
  0xd8   : > { %v326_v14 = vpop.f32.mrf.mxu0  ;;  %v567_v15 = vpop.f32.mrf.mxu1 }
  0xd9   : > { %366 = vst.msk [vmem:[%s210_s8] sm:$0xff] %vm365_vm2, %v326_v14  ;;  %v388_v16 = vmul.f32 %v326_v14, %v326_v14  ;;  %371 = vst.msk [vmem:[%s210_s8 + $0x28] sm:$0xff] %vm365_vm2, %v567_v15  ;;  %v374_v20 = vadd.f32 %v561_v13, %v326_v14  ;;  %v393_v33 = vmul.f32 %v567_v15, %v567_v15 }
  0xda   : > { %v564_v17 = vpop.f32.mrf.mxu0  ;;  %v346_v18 = vpop.f32.mrf.mxu1 }
  0xdb   : > { %369 = vst.msk [vmem:[%s210_s8 + $0x18] sm:$0xff] %vm365_vm2, %v564_v17  ;;  %370 = vst.msk [vmem:[%s210_s8 + $0x20] sm:$0xff] %vm365_vm2, %v346_v18  ;;  %v396_v23 = vadd.f32 %v389_v19, %v388_v16  ;;  %v391_v27 = vmul.f32 %v564_v17, %v564_v17  ;;  %v392_v32 = vmul.f32 %v346_v18, %v346_v18 }
  0xdc   : > { %v336_v21 = vpop.f32.mrf.mxu0  ;;  %v570_v22 = vpop.f32.mrf.mxu1 }
  0xdd   : > { %368 = vst.msk [vmem:[%s210_s8 + $0x10] sm:$0xff] %vm365_vm2, %v336_v21  ;;  %v375_v24 = vadd.f32 %v374_v20, %v336_v21  ;;  %v390_v25 = vmul.f32 %v336_v21, %v336_v21  ;;  %373 = vst.msk [vmem:[%s210_s8 + $0x38] sm:$0xff] %vm365_vm2, %v570_v22  ;;  %v395_v39 = vmul.f32 %v570_v22, %v570_v22 }
  0xde   : > { %v356_v26 = vpop.f32.mrf.mxu1 }
  0xdf   : > { %v376_v28 = vadd.f32 %v564_v17, %v375_v24  ;;  %v397_v29 = vadd.f32 %v396_v23, %v390_v25  ;;  %372 = vst.msk [vmem:[%s210_s8 + $0x30] sm:$0xff] %vm365_vm2, %v356_v26  ;;  %v394_v37 = vmul.f32 %v356_v26, %v356_v26 }
  0xe1   : > { %v398_v30 = vadd.f32 %v397_v29, %v391_v27  ;;  %v377_v31 = vadd.f32 %v376_v28, %v346_v18 }
  0xe3   : > { %v399_v34 = vadd.f32 %v398_v30, %v392_v32  ;;  %v378_v35 = vadd.f32 %v567_v15, %v377_v31 }
  0xe5   : > { %v379_v36 = vadd.f32 %v378_v35, %v356_v26  ;;  %v400_v38 = vadd.f32 %v399_v34, %v393_v33 }
  0xe7   : > { %v380_v40 = vadd.f32 %v570_v22, %v379_v36  ;;  %v401_v41 = vadd.f32 %v400_v38, %v394_v37 }
  0xe9   : > { %v381_v42 = vrot.slane %v380_v40, 4  ;;  %v402_v43 = vadd.f32 %v401_v41, %v395_v39 }
  0xeb   : > { %v382_v44 = vadd.f32 %v381_v42, %v380_v40  ;;  %v403_v45 = vrot.slane %v402_v43, 4 }
  0xed   : > { %v383_v46 = vrot.slane %v382_v44, 2  ;;  %v404_v47 = vadd.f32 %v403_v45, %v402_v43 }
  0xef   : > { %v384_v48 = vadd.f32 %v383_v46, %v382_v44  ;;  %v405_v49 = vrot.slane %v404_v47, 2 }
  0xf1   : > { %v385_v50 = vrot.slane %v384_v48, 1  ;;  %v406_v51 = vadd.f32 %v405_v49, %v404_v47 }
  0xf3   : > { %v386_v52 = vadd.f32 %v385_v50, %v384_v48  ;;  %v407_v53 = vrot.slane %v406_v51, 1 }
  0xf5   : > { %387 = vst [vmem:[%s214_s11] sm:$0x1] %v386_v52  ;;  %v408_v54 = vadd.f32 %v407_v53, %v406_v51 }
  0xf7   : > { %409 = vst [vmem:[%s217_s14] sm:$0x1] %v408_v54 }
  0xf8 PF: > { %s15_s15 = sadd.s32 1, %s595_s15  }
  0xf9   : > { %p12_p5 = scmp.ge.s32.totalorder %s15_s15, 4  }
  0xfb   :  { %14 = sbr.rel (!%p12_p5) target bundleno = 1 (0x1), region = 82 }

// kernel: resblock_pallas.8
= control target key start
LH: loop header
LB: loop body
LE: loop exit
PB: predicated region body
PF: predicated region fallthrough
CT: control target
= control target key end

     0   :  { %s641_s15 = smov 0   ;;  %s729_s0 = inlined_call_operand.vmem [shape: f32[128,72], index: 0, kind: input, shape index: {}]   ;;  %s730_s1 = inlined_call_operand.vmem [shape: f32[72,128], index: 1, kind: input, shape index: {}]   ;;  %s731_s2 = inlined_call_operand.vmem [shape: f32[128,8], index: 2, kind: output, shape index: {0}]   ;;  %s732_s3 = inlined_call_operand.vmem [shape: f32[2,1,128], index: 3, kind: output, shape index: {1}]   ;;  %s733_s4 = inlined_call_operand.vmem [shape: f32[2,1,128], index: 4, kind: output, shape index: {2}]  }
   0x1 LB: > { %s647_s16 = sadd.s32 4294967295, %s614_s15   ;;  %p520_p0 = scmp.ge.s32.totalorder %s614_s15, 1  ;;  %s614_s15 = sphi %s641_s15, %s15_s15  }
   0x2   : > { %p168_p1 = scmp.lt.s32.totalorder %s614_s15, 3 }
   0x4   : > { %p169_p2 = pnand %p520_p0, %p168_p1 }
   0x5   : > { %s521_s21 = sshll.u32 (!%p169_p2), %s647_s16, 3  ;;  %p212_p4 = scmp.lt.s32.totalorder (!%p169_p2), %s647_s16, 1 }
   0x6   : > { %172 = sbr.rel (%p169_p2) target bundleno = 256 (0x100), region = 28  ;;  %p201_p3 = scmp.lt.s32.totalorder (!%p169_p2), %s521_s21, 15 }
   0xb   : > { %v234_v0 = vld [vmem:[%s730_s1 + $0x40] sm:$0xff]  ;;  %v233_v1 = vld [vmem:[%s730_s1 + $0x38] sm:$0xff]  ;;  %v232_v2 = vld [vmem:[%s730_s1 + $0x30] sm:$0xff]  ;;  %s735_s21 = smov (!%p201_p3, %s521_s21), 15  ;;  %vm235_vm0 = vcmask 588800   ;;  %vm365_vm1 = vcmask 64512  }
   0xc   : > { %552 = vmatprep.subr.mxu0 %v234_v0  ;;  %582 = vmatprep.subr.mxu1 %v234_v0  ;;  %v231_v3 = vld [vmem:[%s730_s1 + $0x28] sm:$0xff]  ;;  %s522_s26 = sshll.u32 %s735_s21, 3  ;;  %v230_v4 = vld [vmem:[%s730_s1 + $0x20] sm:$0xff]  ;;  %v229_v5 = vld [vmem:[%s730_s1 + $0x18] sm:$0xff]  ;;  %s737_s16 = smov (!%p212_p4, %s647_s16), 1 }
   0xd   : > { %553 = vmatpush3.msra.mxu0 %v234_v0  ;;  %591 = vmatpush3.msra.mxu1 %v234_v0  ;;  %s675_s5 = scalar_lea.vmem %s729_s0, %s522_s26  ;;  %v228_v6 = vld [vmem:[%s730_s1 + $0x10] sm:$0xff]  ;;  %v227_v8 = vld [vmem:[%s730_s1 + $0x8] sm:$0xff]  ;;  %v226_v9 = vld [vmem:[%s730_s1] sm:$0xff]  ;;  %s210_s18 = scalar_lea.vmem %s731_s2, %s522_s26 }
   0xe   : > { %554 = vmatprep.subr.mxu0 %v233_v1  ;;  %583 = vmatprep.subr.mxu1 %v233_v1  ;;  %v218_v7 = vld [vmem:[%s675_s5] sm:$0xff]  ;;  %v219_v10 = vld [vmem:[%s675_s5 + $0x8] sm:$0xff]  ;;  %v220_v11 = vld [vmem:[%s675_s5 + $0x10] sm:$0xff]  ;;  %s214_s21 = scalar_lea.vmem %s732_s3, %s737_s16  ;;  %s217_s24 = scalar_lea.vmem %s733_s4, %s737_s16 }
   0xf   : > { %555 = vmatpush3.msra.mxu0 %v233_v1  ;;  %592 = vmatpush3.msra.mxu1 %v233_v1  ;;  %v222_v12 = vld [vmem:[%s675_s5 + $0x20] sm:$0xff]  ;;  %v223_v13 = vld [vmem:[%s675_s5 + $0x28] sm:$0xff]  ;;  %v224_v14 = vld [vmem:[%s675_s5 + $0x30] sm:$0xff] }
  0x10   : > { %556 = vmatprep.subr.mxu0 %v232_v2  ;;  %584 = vmatprep.subr.mxu1 %v232_v2  ;;  %v221_v15 = vld [vmem:[%s675_s5 + $0x18] sm:$0xff] }
  0x11   : > { %557 = vmatpush3.msra.mxu0 %v232_v2  ;;  %593 = vmatpush3.msra.mxu1 %v232_v2  ;;  %v225_v16 = vld [vmem:[%s675_s5 + $0x38] sm:$0xff] }
  0x12   : > { %558 = vmatprep.subr.mxu0 %v231_v3  ;;  %585 = vmatprep.subr.mxu1 %v231_v3 }
  0x13   : > { %559 = vmatpush3.msra.mxu0 %v231_v3  ;;  %594 = vmatpush3.msra.mxu1 %v231_v3 }
  0x14   : > { %560 = vmatprep.subr.mxu0 %v230_v4  ;;  %586 = vmatprep.subr.mxu1 %v230_v4 }
  0x15   : > { %561 = vmatpush3.msra.mxu0 %v230_v4  ;;  %595 = vmatpush3.msra.mxu1 %v230_v4 }
  0x16   : > { %562 = vmatprep.subr.mxu0 %v229_v5  ;;  %587 = vmatprep.subr.mxu1 %v229_v5 }
  0x17   : > { %563 = vmatpush3.msra.mxu0 %v229_v5  ;;  %596 = vmatpush3.msra.mxu1 %v229_v5 }
  0x18   : > { %564 = vmatprep.subr.mxu0 %v228_v6  ;;  %570 = vmatprep.mubr.msk.f32.mxu0 %vm235_vm0, %v218_v7 }
  0x19   : > { %565 = vmatpush3.msra.mxu0 %v228_v6  ;;  %588 = vmatprep.subr.mxu1 %v228_v6 }
  0x1a   : > { %566 = vmatprep.subr.mxu0 %v227_v8  ;;  %597 = vmatpush3.msra.mxu1 %v228_v6 }
  0x1b   : > { %567 = vmatpush3.msra.mxu0 %v227_v8  ;;  %589 = vmatprep.subr.mxu1 %v227_v8 }
  0x1c   : > { %568 = vmatprep.subr.mxu0 %v226_v9  ;;  %598 = vmatpush3.msra.mxu1 %v227_v8 }
  0x1d   : > { %569 = vmatpush3.msra.mxu0 %v226_v9  ;;  %590 = vmatprep.subr.mxu1 %v226_v9 }
  0x1e   : > { %571 = vmatmul.mubr.msk.f32.vlgmr.msra.gmra.mxu0 %vm235_vm0, %v219_v10  ;;  %599 = vmatpush3.msra.mxu1 %v226_v9 }
  0x1f   : > { %573 = vmatprep.mubr.msk.f32.mxu0 %vm235_vm0, %v220_v11  ;;  %576 = vmatprep.mubr.msk.f32.mxu1 %vm235_vm0, %v222_v12 }
  0x20   : > { %577 = vmatmul.mubr.msk.f32.vlgmr.msra.gmra.mxu1 %vm235_vm0, %v223_v13 }
  0x21   : > { %579 = vmatprep.mubr.msk.f32.mxu1 %vm235_vm0, %v224_v14 }
  0x22   : > { %574 = vmatmul.mubr.msk.f32.gmra.mxu0 %vm235_vm0, %v221_v15 }
  0x24   : > { %580 = vmatmul.mubr.msk.f32.gmra.mxu1 %vm235_vm0, %v225_v16 }
  0xde   : > { %v572_v17 = vpop.f32.mrf.mxu0 }
  0xdf   : > { %367 = vst.msk [vmem:[%s210_s18 + $0x8] sm:$0xff] %vm365_vm1, %v572_v17  ;;  %v389_v23 = vmul.f32 %v572_v17, %v572_v17 }
  0xe0   : > { %v326_v18 = vpop.f32.mrf.mxu0  ;;  %v578_v19 = vpop.f32.mrf.mxu1 }
  0xe1   : > { %366 = vst.msk [vmem:[%s210_s18] sm:$0xff] %vm365_vm1, %v326_v18  ;;  %v388_v20 = vmul.f32 %v326_v18, %v326_v18  ;;  %371 = vst.msk [vmem:[%s210_s18 + $0x28] sm:$0xff] %vm365_vm1, %v578_v19  ;;  %v374_v24 = vadd.f32 %v572_v17, %v326_v18  ;;  %v393_v37 = vmul.f32 %v578_v19, %v578_v19 }
  0xe2   : > { %v575_v21 = vpop.f32.mrf.mxu0  ;;  %v346_v22 = vpop.f32.mrf.mxu1 }
  0xe3   : > { %369 = vst.msk [vmem:[%s210_s18 + $0x18] sm:$0xff] %vm365_vm1, %v575_v21  ;;  %370 = vst.msk [vmem:[%s210_s18 + $0x20] sm:$0xff] %vm365_vm1, %v346_v22  ;;  %v396_v27 = vadd.f32 %v389_v23, %v388_v20  ;;  %v391_v31 = vmul.f32 %v575_v21, %v575_v21  ;;  %v392_v36 = vmul.f32 %v346_v22, %v346_v22 }
  0xe4   : > { %v336_v25 = vpop.f32.mrf.mxu0  ;;  %v581_v26 = vpop.f32.mrf.mxu1 }
  0xe5   : > { %368 = vst.msk [vmem:[%s210_s18 + $0x10] sm:$0xff] %vm365_vm1, %v336_v25  ;;  %v375_v28 = vadd.f32 %v374_v24, %v336_v25  ;;  %v390_v29 = vmul.f32 %v336_v25, %v336_v25  ;;  %373 = vst.msk [vmem:[%s210_s18 + $0x38] sm:$0xff] %vm365_vm1, %v581_v26  ;;  %v395_v43 = vmul.f32 %v581_v26, %v581_v26 }
  0xe6   : > { %v356_v30 = vpop.f32.mrf.mxu1 }
  0xe7   : > { %v376_v32 = vadd.f32 %v575_v21, %v375_v28  ;;  %v397_v33 = vadd.f32 %v396_v27, %v390_v29  ;;  %372 = vst.msk [vmem:[%s210_s18 + $0x30] sm:$0xff] %vm365_vm1, %v356_v30  ;;  %v394_v41 = vmul.f32 %v356_v30, %v356_v30 }
  0xe9   : > { %v398_v34 = vadd.f32 %v397_v33, %v391_v31  ;;  %v377_v35 = vadd.f32 %v376_v32, %v346_v22 }
  0xeb   : > { %v399_v38 = vadd.f32 %v398_v34, %v392_v36  ;;  %v378_v39 = vadd.f32 %v578_v19, %v377_v35 }
  0xed   : > { %v379_v40 = vadd.f32 %v378_v39, %v356_v30  ;;  %v400_v42 = vadd.f32 %v399_v38, %v393_v37 }
  0xef   : > { %v380_v44 = vadd.f32 %v581_v26, %v379_v40  ;;  %v401_v45 = vadd.f32 %v400_v42, %v394_v41 }
  0xf1   : > { %v381_v46 = vrot.slane %v380_v44, 4  ;;  %v402_v47 = vadd.f32 %v401_v45, %v395_v43 }
  0xf3   : > { %v382_v48 = vadd.f32 %v381_v46, %v380_v44  ;;  %v403_v49 = vrot.slane %v402_v47, 4 }
  0xf5   : > { %v383_v50 = vrot.slane %v382_v48, 2  ;;  %v404_v51 = vadd.f32 %v403_v49, %v402_v47 }
  0xf7   : > { %v384_v52 = vadd.f32 %v383_v50, %v382_v48  ;;  %v405_v53 = vrot.slane %v404_v51, 2 }
  0xf9   : > { %v385_v54 = vrot.slane %v384_v52, 1  ;;  %v406_v55 = vadd.f32 %v405_v53, %v404_v51 }
  0xfb   : > { %v386_v56 = vadd.f32 %v385_v54, %v384_v52  ;;  %v407_v57 = vrot.slane %v406_v55, 1 }
  0xfd   : > { %387 = vst [vmem:[%s214_s21] sm:$0x1] %v386_v56  ;;  %v408_v58 = vadd.f32 %v407_v57, %v406_v55 }
  0xff   : > { %409 = vst [vmem:[%s217_s24] sm:$0x1] %v408_v58 }
 0x100 PF: > { %s15_s15 = sadd.s32 1, %s614_s15  }
 0x101   : > { %p12_p5 = scmp.ge.s32.totalorder %s15_s15, 4  }
 0x103   :  { %14 = sbr.rel (!%p12_p5) target bundleno = 1 (0x1), region = 82 }

// kernel: resblock_pallas.7
= control target key start
LH: loop header
LB: loop body
LE: loop exit
PB: predicated region body
PF: predicated region fallthrough
CT: control target
= control target key end

     0   :  { %s598_s15 = smov 0   ;;  %s645_s0 = inlined_call_operand.vmem [shape: f32[128,4], index: 0, kind: input, shape index: {}]   ;;  %s646_s1 = inlined_call_operand.vmem [shape: f32[4,128], index: 1, kind: input, shape index: {}]   ;;  %s647_s2 = inlined_call_operand.vmem [shape: f32[128,8], index: 2, kind: output, shape index: {0}]   ;;  %s648_s3 = inlined_call_operand.vmem [shape: f32[2,1,128], index: 3, kind: output, shape index: {1}]   ;;  %s649_s4 = inlined_call_operand.vmem [shape: f32[2,1,128], index: 4, kind: output, shape index: {2}]  }
   0x1 LB: > { %s604_s16 = sadd.s32 4294967295, %s571_s15   ;;  %p516_p0 = scmp.ge.s32.totalorder %s571_s15, 1  ;;  %s571_s15 = sphi %s598_s15, %s15_s15  }
   0x2   : > { %p168_p1 = scmp.lt.s32.totalorder %s571_s15, 3 }
   0x4   : > { %p169_p2 = pnand %p516_p0, %p168_p1 }
   0x5   : > { %s517_s19 = sshll.u32 (!%p169_p2), %s604_s16, 3  ;;  %p212_p4 = scmp.lt.s32.totalorder (!%p169_p2), %s604_s16, 1 }
   0x6   : > { %172 = sbr.rel (%p169_p2) target bundleno = 242 (0xf2), region = 28  ;;  %p201_p3 = scmp.lt.s32.totalorder (!%p169_p2), %s517_s19, 15 }
   0xb   : > { %v226_v0 = vld [vmem:[%s646_s1] sm:$0xf]  ;;  %vm252_vm0 = vcmask 1043456   ;;  %s651_s19 = smov (!%p201_p3, %s517_s19), 15  ;;  %vm227_vm1 = vcmask 31744   ;;  %vm361_vm2 = vcmask 64512  }
   0xc   : > { %541 = vmatprep.subr.msk.mxu0 %vm252_vm0, %v226_v0  ;;  %555 = vmatprep.subr.msk.mxu1 %vm252_vm0, %v226_v0  ;;  %s518_s20 = sshll.u32 %s651_s19, 3  ;;  %s653_s16 = smov (!%p212_p4, %s604_s16), 1 }
   0xd   : > { %542 = vmatpush3.msk.msra.mxu0 %vm252_vm0, %v226_v0  ;;  %556 = vmatpush3.msk.msra.mxu1 %vm252_vm0, %v226_v0  ;;  %s204_s23 = scalar_lea.vmem %s645_s0, %s518_s20  ;;  %s210_s26 = scalar_lea.vmem %s647_s2, %s518_s20 }
   0xe   : > { %v218_v1 = vld [vmem:[%s204_s23] sm:$0xff]  ;;  %v219_v2 = vld [vmem:[%s204_s23 + $0x8] sm:$0xff]  ;;  %v220_v3 = vld [vmem:[%s204_s23 + $0x10] sm:$0xff]  ;;  %s214_s29 = scalar_lea.vmem %s648_s3, %s653_s16  ;;  %s217_s6 = scalar_lea.vmem %s649_s4, %s653_s16 }
   0xf   : > { %543 = vmatprep.mubr.msk.f32.mxu0 %vm227_vm1, %v218_v1  ;;  %v222_v4 = vld [vmem:[%s204_s23 + $0x20] sm:$0xff]  ;;  %v223_v5 = vld [vmem:[%s204_s23 + $0x28] sm:$0xff]  ;;  %v224_v6 = vld [vmem:[%s204_s23 + $0x30] sm:$0xff] }
  0x10   : > { %544 = vmatmul.mubr.msk.f32.vlgmr.msra.gmra.mxu0 %vm227_vm1, %v219_v2  ;;  %549 = vmatprep.mubr.msk.f32.mxu1 %vm227_vm1, %v222_v4  ;;  %v221_v7 = vld [vmem:[%s204_s23 + $0x18] sm:$0xff] }
  0x11   : > { %546 = vmatprep.mubr.msk.f32.mxu0 %vm227_vm1, %v220_v3  ;;  %550 = vmatmul.mubr.msk.f32.vlgmr.msra.gmra.mxu1 %vm227_vm1, %v223_v5  ;;  %v225_v8 = vld [vmem:[%s204_s23 + $0x38] sm:$0xff] }
  0x12   : > { %552 = vmatprep.mubr.msk.f32.mxu1 %vm227_vm1, %v224_v6 }
  0x14   : > { %547 = vmatmul.mubr.msk.f32.gmra.mxu0 %vm227_vm1, %v221_v7 }
  0x15   : > { %553 = vmatmul.mubr.msk.f32.gmra.mxu1 %vm227_vm1, %v225_v8 }
  0xd0   : > { %v545_v9 = vpop.f32.mrf.mxu0 }
  0xd1   : > { %363 = vst.msk [vmem:[%s210_s26 + $0x8] sm:$0xff] %vm361_vm2, %v545_v9  ;;  %v551_v10 = vpop.f32.mrf.mxu1  ;;  %v385_v15 = vmul.f32 %v545_v9, %v545_v9 }
  0xd2   : > { %v322_v11 = vpop.f32.mrf.mxu0  ;;  %367 = vst.msk [vmem:[%s210_s26 + $0x28] sm:$0xff] %vm361_vm2, %v551_v10  ;;  %v389_v29 = vmul.f32 %v551_v10, %v551_v10 }
  0xd3   : > { %362 = vst.msk [vmem:[%s210_s26] sm:$0xff] %vm361_vm2, %v322_v11  ;;  %v384_v12 = vmul.f32 %v322_v11, %v322_v11  ;;  %v342_v13 = vpop.f32.mrf.mxu1  ;;  %v370_v16 = vadd.f32 %v545_v9, %v322_v11 }
  0xd4   : > { %v548_v14 = vpop.f32.mrf.mxu0  ;;  %366 = vst.msk [vmem:[%s210_s26 + $0x20] sm:$0xff] %vm361_vm2, %v342_v13  ;;  %v388_v28 = vmul.f32 %v342_v13, %v342_v13 }
  0xd5   : > { %365 = vst.msk [vmem:[%s210_s26 + $0x18] sm:$0xff] %vm361_vm2, %v548_v14  ;;  %v554_v17 = vpop.f32.mrf.mxu1  ;;  %v392_v19 = vadd.f32 %v385_v15, %v384_v12  ;;  %v387_v23 = vmul.f32 %v548_v14, %v548_v14 }
  0xd6   : > { %v332_v18 = vpop.f32.mrf.mxu0  ;;  %369 = vst.msk [vmem:[%s210_s26 + $0x38] sm:$0xff] %vm361_vm2, %v554_v17  ;;  %v391_v35 = vmul.f32 %v554_v17, %v554_v17 }
  0xd7   : > { %364 = vst.msk [vmem:[%s210_s26 + $0x10] sm:$0xff] %vm361_vm2, %v332_v18  ;;  %v371_v20 = vadd.f32 %v370_v16, %v332_v18  ;;  %v386_v21 = vmul.f32 %v332_v18, %v332_v18  ;;  %v352_v22 = vpop.f32.mrf.mxu1 }
  0xd8   : > { %368 = vst.msk [vmem:[%s210_s26 + $0x30] sm:$0xff] %vm361_vm2, %v352_v22  ;;  %v390_v33 = vmul.f32 %v352_v22, %v352_v22 }
  0xd9   : > { %v372_v24 = vadd.f32 %v548_v14, %v371_v20  ;;  %v393_v25 = vadd.f32 %v392_v19, %v386_v21 }
  0xdb   : > { %v394_v26 = vadd.f32 %v393_v25, %v387_v23  ;;  %v373_v27 = vadd.f32 %v372_v24, %v342_v13 }
  0xdd   : > { %v395_v30 = vadd.f32 %v394_v26, %v388_v28  ;;  %v374_v31 = vadd.f32 %v551_v10, %v373_v27 }
  0xdf   : > { %v375_v32 = vadd.f32 %v374_v31, %v352_v22  ;;  %v396_v34 = vadd.f32 %v395_v30, %v389_v29 }
  0xe1   : > { %v376_v36 = vadd.f32 %v554_v17, %v375_v32  ;;  %v397_v37 = vadd.f32 %v396_v34, %v390_v33 }
  0xe3   : > { %v377_v38 = vrot.slane %v376_v36, 4  ;;  %v398_v39 = vadd.f32 %v397_v37, %v391_v35 }
  0xe5   : > { %v378_v40 = vadd.f32 %v377_v38, %v376_v36  ;;  %v399_v41 = vrot.slane %v398_v39, 4 }
  0xe7   : > { %v379_v42 = vrot.slane %v378_v40, 2  ;;  %v400_v43 = vadd.f32 %v399_v41, %v398_v39 }
  0xe9   : > { %v380_v44 = vadd.f32 %v379_v42, %v378_v40  ;;  %v401_v45 = vrot.slane %v400_v43, 2 }
  0xeb   : > { %v381_v46 = vrot.slane %v380_v44, 1  ;;  %v402_v47 = vadd.f32 %v401_v45, %v400_v43 }
  0xed   : > { %v382_v48 = vadd.f32 %v381_v46, %v380_v44  ;;  %v403_v49 = vrot.slane %v402_v47, 1 }
  0xef   : > { %383 = vst [vmem:[%s214_s29] sm:$0x1] %v382_v48  ;;  %v404_v50 = vadd.f32 %v403_v49, %v402_v47 }
  0xf1   : > { %405 = vst [vmem:[%s217_s6] sm:$0x1] %v404_v50 }
  0xf2 PF: > { %s15_s15 = sadd.s32 1, %s571_s15  }
  0xf3   : > { %p12_p5 = scmp.ge.s32.totalorder %s15_s15, 4  }
  0xf5   :  { %14 = sbr.rel (!%p12_p5) target bundleno = 1 (0x1), region = 82 }

// kernel: resblock_pallas.9
= control target key start
LH: loop header
LB: loop body
LE: loop exit
PB: predicated region body
PF: predicated region fallthrough
CT: control target
= control target key end

     0   :  { %s124_s0 = inlined_call_operand.vmem [shape: f32[8,128], index: 0, kind: input, shape index: {}]   ;;  %s125_s1 = inlined_call_operand.vmem [shape: f32[1,128], index: 1, kind: input, shape index: {}]   ;;  %s126_s2 = inlined_call_operand.vmem [shape: f32[1,128], index: 2, kind: input, shape index: {}]   ;;  %s127_s3 = inlined_call_operand.vmem [shape: f32[8,128], index: 3, kind: input, shape index: {}]   ;;  %s128_s4 = inlined_call_operand.vmem [shape: f32[1,128], index: 4, kind: input, shape index: {}]   ;;  %s129_s5 = inlined_call_operand.vmem [shape: f32[1,128], index: 5, kind: input, shape index: {}]   ;;  %s130_s6 = inlined_call_operand.vmem [shape: f32[8,128], index: 6, kind: output, shape index: {}]  }
   0x1   :  { %v23_v0 = vld [vmem:[%s124_s0] sm:$0xff] }
   0x2   :  { %v64_v1 = vld [vmem:[%s125_s1] ss:$0 sm:$0xff] }
   0x3   :  { %v65_v2 = vld [vmem:[%s126_s2] ss:$0 sm:$0xff]  ;;  %v31_v3 = vmul.f32 %v64_v1, %v23_v0 }
   0x4   :  { %v40_v4 = vld [vmem:[%s127_s3] sm:$0xff] }
   0x5   :  { %v66_v5 = vld [vmem:[%s128_s4] ss:$0 sm:$0xff]  ;;  %v39_v8 = vadd.f32 %v65_v2, %v31_v3 }
   0x6   :  { %v67_v6 = vld [vmem:[%s129_s5] ss:$0 sm:$0xff]  ;;  %v48_v7 = vmul.f32 %v66_v5, %v40_v4 }
   0x8   :  { %v56_v9 = vadd.f32 %v67_v6, %v48_v7 }
   0xa   :  { %v57_v10 = vadd.f32 %v56_v9, %v39_v8 }
   0xc   :  { %v58_v11 = vmax.f32 %v57_v10, 0.0 }
   0xe   :  { %59 = vst [vmem:[%s130_s6] sm:$0xff] %v58_v11 }

</bundles_post_ra>
